<compile_context>
chip_gen: v7x
topology: tpu7x:2x2x1
jax: 0.10.0
libtpu: 0.0.40
codegen_flags: <defaults>
</compile_context>

<pallas_src>
import math
import jax
import jax.numpy as jnp
from jax import lax
from jax.experimental import pallas as pl
from jax.experimental.pallas import tpu as pltpu

BN_EPS = 1e-5
_DN = ('NDHWC', 'DHWIO', 'NDHWC')


# ---------------------------------------------------------------------------
# Pallas epilogue kernels (lane-dense [rows, LANE] tiles, LANE % 128 == 0)
# ---------------------------------------------------------------------------
def _make_plain_kernel(apply_relu):
    # out = [relu](y + shift[channel])
    def kernel(y_ref, shift_ref, o_ref):
        v = y_ref[...].astype(jnp.float32) + shift_ref[...]
        if apply_relu:
            v = jnp.maximum(v, 0.0)
        o_ref[...] = v.astype(o_ref.dtype)
    return kernel


def _make_redir_kernel(apply_relu):
    # out = [relu](y + res @ blockdiag(W_redir) + shift[channel])
    # The 1x1x1 redir conv is a per-voxel (Cin,Cout) matmul; with channels
    # innermost and LANE % C == 0 it becomes one lane-dense block-diagonal
    # matmul per tile, executed on the otherwise-idle MXU.
    def kernel(y_ref, r_ref, w_ref, shift_ref, o_ref):
        red = jnp.dot(r_ref[...], w_ref[...], preferred_element_type=jnp.float32)
        v = y_ref[...].astype(jnp.float32) + red + shift_ref[...]
        if apply_relu:
            v = jnp.maximum(v, 0.0)
        o_ref[...] = v.astype(o_ref.dtype)
    return kernel


# ---------------------------------------------------------------------------
# Tiling plan
# ---------------------------------------------------------------------------
def _choose_block_rows(rows, lane):
    # Multiple of 16 (bf16 sublane packing) that divides rows, targeting
    # ~2 MiB f32 y-blocks; otherwise the full extent (block == array dim).
    if rows % 16 != 0:
        return rows
    cap = max(16, (512 * 1024) // lane)
    br = 16
    while br * 2 <= min(cap, rows) and rows % (br * 2) == 0:
        br *= 2
    return br


def _plan(total, cout):
    lane = 128 * cout // math.gcd(128, cout)      # lane-dense & multiple of C
    if lane > 4096 or total % lane != 0:
        return None
    rows = total // lane
    br = _choose_block_rows(rows, lane)
    if br == rows and rows * lane > (1 << 20):    # single block would blow VMEM
        return None
    return lane, rows, br


def _jnp_epilogue(y, shift, residual=None, relu=True, out_dtype=jnp.bfloat16):
    # Correctness fallback for shapes the lane-dense plan cannot tile.
    v = y.astype(jnp.float32)
    if residual is not None:
        v = v + residual.astype(jnp.float32)
    v = v + shift.astype(jnp.float32)
    if relu:
        v = jnp.maximum(v, 0.0)
    return v.astype(out_dtype)


# ---------------------------------------------------------------------------
# Fused epilogue wrappers
# ---------------------------------------------------------------------------
def fused_bn_relu(y, shift, relu=True, out_dtype=jnp.bfloat16):
    """out = [relu](y + shift[channel]); y is the f32 conv output (NDHWC)."""
    cout = y.shape[-1]
    plan = _plan(y.size, cout)
    if plan is None:
        return _jnp_epilogue(y, shift, None, relu, out_dtype)
    lane, rows, br = plan
    shift_row = jnp.tile(shift.astype(jnp.float32), lane // cout).reshape(1, lane)
    y2 = y.reshape(rows, lane)
    out = pl.pallas_call(
        _make_plain_kernel(relu),
        out_shape=jax.ShapeDtypeStruct((rows, lane), out_dtype),
        grid=(rows // br,),
        in_specs=[pl.BlockSpec((br, lane), lambda i: (i, 0)),
                  pl.BlockSpec((1, lane), lambda i: (0, 0))],
        out_specs=pl.BlockSpec((br, lane), lambda i: (i, 0)),
        compiler_params=pltpu.CompilerParams(dimension_semantics=("parallel",)),
    )(y2, shift_row)
    return out.reshape(y.shape)


def _redir_conv_xla(res, w_mat):
    cin, cout = w_mat.shape
    w = w_mat.reshape(1, 1, 1, cin, cout).astype(jnp.bfloat16)
    return lax.conv_general_dilated(
        res, w, (1, 1, 1), [(0, 0)] * 3, dimension_numbers=_DN,
        preferred_element_type=jnp.float32)


def fused_redir_add_relu(y, res, w_redir, shift, out_dtype=jnp.bfloat16):
    """out = relu(y + redir1x1(res) + shift[channel]).

    y:   f32 deconv output (NDHWC), channels = Cout
    res: bf16 residual-branch input (NDHWC), channels = Cin (== Cout here)
    w_redir: (Cin, Cout) redir weight with BN scale already folded in
    """
    cout = y.shape[-1]
    cin = res.shape[-1]
    plan = _plan(y.size, cout)
    if plan is None or cin != cout or res.size != y.size:
        r = _redir_conv_xla(res, w_redir)
        return _jnp_epilogue(y, shift, r, True, out_dtype)
    lane, rows, br = plan
    n_blk = lane // cout
    w_bd = jnp.kron(jnp.eye(n_blk, dtype=jnp.float32),
                    w_redir.astype(jnp.float32)).astype(jnp.bfloat16)
    shift_row = jnp.tile(shift.astype(jnp.float32), n_blk).reshape(1, lane)
    y2 = y.reshape(rows, lane)
    r2 = res.reshape(rows, lane)
    out = pl.pallas_call(
        _make_redir_kernel(True),
        out_shape=jax.ShapeDtypeStruct((rows, lane), out_dtype),
        grid=(rows // br,),
        in_specs=[pl.BlockSpec((br, lane), lambda i: (i, 0)),
                  pl.BlockSpec((br, lane), lambda i: (i, 0)),
                  pl.BlockSpec((lane, lane), lambda i: (0, 0)),
                  pl.BlockSpec((1, lane), lambda i: (0, 0))],
        out_specs=pl.BlockSpec((br, lane), lambda i: (i, 0)),
        compiler_params=pltpu.CompilerParams(dimension_semantics=("parallel",)),
    )(y2, r2, w_bd, shift_row)
    return out.reshape(y.shape)


# ---------------------------------------------------------------------------
# BN folding + weight layout prep (BN scale folded directly into conv weights)
# ---------------------------------------------------------------------------
def _bn_fold(bn):
    gamma, beta, mean, var = bn
    scale = gamma / jnp.sqrt(var + BN_EPS)
    shift = beta - mean * scale
    return scale, shift


def _prep_conv(w, bn):
    # PyTorch Conv3d weight (Cout, Cin, kd, kh, kw) -> DHWIO, BN scale folded.
    scale, shift = _bn_fold(bn)
    w_dhwio = jnp.transpose(w, (2, 3, 4, 1, 0)) * scale
    return w_dhwio.astype(jnp.bfloat16), shift


def _prep_deconv(w_t, bn):
    # PyTorch ConvTranspose3d weight (Cin, Cout, kd, kh, kw) -> spatially
    # flipped DHWIO weight of the equivalent forward conv, BN scale folded.
    scale, shift = _bn_fold(bn)
    w_flip = w_t[:, :, ::-1, ::-1, ::-1]
    w_dhwio = jnp.transpose(w_flip, (2, 3, 4, 0, 1)) * scale
    return w_dhwio.astype(jnp.bfloat16), shift


def _prep_redir(w, bn):
    # PyTorch 1x1x1 Conv3d weight (Cout, Cin, 1, 1, 1) -> (Cin, Cout) matrix
    # with BN scale folded into the output channel.
    scale, shift = _bn_fold(bn)
    w_mat = jnp.transpose(w[:, :, 0, 0, 0] * scale[:, None], (1, 0))
    return w_mat.astype(jnp.float32), shift


def _conv3d(x, w, stride, pad):
    return lax.conv_general_dilated(
        x, w, window_strides=(stride,) * 3, padding=[(pad, pad)] * 3,
        dimension_numbers=_DN, preferred_element_type=jnp.float32)


def _deconv3d(x, w, stride=2, pad=1, output_pad=1):
    # Transposed conv as lhs-dilated conv (no explicit zero-filled tensor).
    k = w.shape[0]
    lo = k - 1 - pad
    hi = k - 1 - pad + output_pad
    return lax.conv_general_dilated(
        x, w, window_strides=(1, 1, 1), padding=[(lo, hi)] * 3,
        lhs_dilation=(stride,) * 3, dimension_numbers=_DN,
        preferred_element_type=jnp.float32)


# ---------------------------------------------------------------------------
# hourglass forward (eval-mode BN), input/output in NCDHW like PyTorch
# ---------------------------------------------------------------------------
def hourglass_forward(x_ncdhw, p):
    x = jnp.transpose(x_ncdhw, (0, 2, 3, 4, 1)).astype(jnp.bfloat16)   # NDHWC

    w1, s1 = _prep_conv(p['conv1_w'], p['conv1_bn'])
    w2, s2 = _prep_conv(p['conv2_w'], p['conv2_bn'])
    w3, s3 = _prep_conv(p['conv3_w'], p['conv3_bn'])
    w4, s4 = _prep_conv(p['conv4_w'], p['conv4_bn'])
    wr1, sr1 = _prep_redir(p['redir1_w'], p['redir1_bn'])
    wr2, sr2 = _prep_redir(p['redir2_w'], p['redir2_bn'])
    w5, s5 = _prep_deconv(p['conv5_w'], p['conv5_bn'])
    w6, s6 = _prep_deconv(p['conv6_w'], p['conv6_bn'])

    c1 = fused_bn_relu(_conv3d(x, w1, 2, 1), s1)
    c2 = fused_bn_relu(_conv3d(c1, w2, 1, 1), s2)
    c3 = fused_bn_relu(_conv3d(c2, w3, 2, 1), s3)
    c4 = fused_bn_relu(_conv3d(c3, w4, 1, 1), s4)

    # Deconv epilogues: deconv-BN shift + redir(1x1x1 conv + BN) + add + ReLU,
    # all fused into a single Pallas pass over the output tensor.
    c5 = fused_redir_add_relu(_deconv3d(c4, w5), c2, wr2, s5 + sr2)
    c6 = fused_redir_add_relu(_deconv3d(c5, w6), x, wr1, s6 + sr1,
                              out_dtype=jnp.float32)

    return jnp.transpose(c6, (0, 4, 1, 2, 3))   # back to NCDHW, f32


# ---------------------------------------------------------------------------
# Pure-JAX f32 reference (same eval-mode BN math, no Pallas, no bf16)
# ---------------------------------------------------------------------------
def _reference_forward(x_ncdhw, p):
    x = jnp.transpose(x_ncdhw, (0, 2, 3, 4, 1))

    def conv(h, w, bn, stride, pad, relu=True):
        scale, shift = _bn_fold(bn)
        wd = jnp.transpose(w, (2, 3, 4, 1, 0)).astype(jnp.float32)
        y = lax.conv_general_dilated(h, wd, (stride,) * 3, [(pad, pad)] * 3,
                                     dimension_numbers=_DN) * scale + shift
        return jnp.maximum(y, 0.0) if relu else y

    def deconv(h, w_t, bn):
        scale, shift = _bn_fold(bn)
        wf = jnp.transpose(w_t[:, :, ::-1, ::-1, ::-1],
                           (2, 3, 4, 0, 1)).astype(jnp.float32)
        y = lax.conv_general_dilated(h, wf, (1, 1, 1), [(1, 2)] * 3,
                                     lhs_dilation=(2, 2, 2),
                                     dimension_numbers=_DN) * scale + shift
        return y

    c1 = conv(x, p['conv1_w'], p['conv1_bn'], 2, 1)
    c2 = conv(c1, p['conv2_w'], p['conv2_bn'], 1, 1)
    c3 = conv(c2, p['conv3_w'], p['conv3_bn'], 2, 1)
    c4 = conv(c3, p['conv4_w'], p['conv4_bn'], 1, 1)
    r2 = conv(c2, p['redir2_w'], p['redir2_bn'], 1, 0, relu=False)
    r1 = conv(x, p['redir1_w'], p['redir1_bn'], 1, 0, relu=False)
    c5 = jnp.maximum(deconv(c4, p['conv5_w'], p['conv5_bn']) + r2, 0.0)
    c6 = jnp.maximum(deconv(c5, p['conv6_w'], p['conv6_bn']) + r1, 0.0)
    return jnp.transpose(c6, (0, 4, 1, 2, 3))


# ---------------------------------------------------------------------------
# parameter init (PyTorch layouts)
# ---------------------------------------------------------------------------
def init_params(key, C):
    keys = iter(jax.random.split(key, 64))

    def conv_w(cout, cin, k):
        fan_in = cin * k ** 3
        return jax.random.normal(next(keys), (cout, cin, k, k, k),
                                 jnp.float32) / math.sqrt(fan_in)

    def deconv_w(cin, cout, k):
        fan_in = cin * k ** 3
        return jax.random.normal(next(keys), (cin, cout, k, k, k),
                                 jnp.float32) / math.sqrt(fan_in)

    def bn(c):
        gamma = 1.0 + 0.1 * jax.random.normal(next(keys), (c,), jnp.float32)
        beta = 0.1 * jax.random.normal(next(keys), (c,), jnp.float32)
        mean = 0.1 * jax.random.normal(next(keys), (c,), jnp.float32)
        var = 0.5 + jax.random.uniform(next(keys), (c,), jnp.float32)
        return (gamma, beta, mean, var)

    return {
        'conv1_w': conv_w(2 * C, C, 3),       'conv1_bn': bn(2 * C),
        'conv2_w': conv_w(2 * C, 2 * C, 3),   'conv2_bn': bn(2 * C),
        'conv3_w': conv_w(4 * C, 2 * C, 3),   'conv3_bn': bn(4 * C),
        'conv4_w': conv_w(4 * C, 4 * C, 3),   'conv4_bn': bn(4 * C),
        'conv5_w': deconv_w(4 * C, 2 * C, 3), 'conv5_bn': bn(2 * C),
        'conv6_w': deconv_w(2 * C, C, 3),     'conv6_bn': bn(C),
        'redir1_w': conv_w(C, C, 1),          'redir1_bn': bn(C),
        'redir2_w': conv_w(2 * C, 2 * C, 1),  'redir2_bn': bn(2 * C),
    }


if __name__ == "__main__":
    C = 4                                   # in_channels
    N, D, H, W = 2, 8, 8, 8                 # D,H,W divisible by 4 (two stride-2 stages)
    key = jax.random.PRNGKey(0)
    kx, kp = jax.random.split(key)
    x = jax.random.normal(kx, (N, C, D, H, W), jnp.float32)   # NCDHW like PyTorch
    params = init_params(kp, C)

    out = jax.jit(hourglass_forward)(x, params)
    out = jax.block_until_ready(out)
    assert out.shape == (N, C, D, H, W), out.shape
    assert bool(jnp.all(jnp.isfinite(out)))

    # Loose numerical check vs a pure-f32 reference (bf16 activations/weights
    # inside the fast path introduce ~1% error; bound is ~30x looser).
    ref = jax.block_until_ready(_reference_forward(x, params))
    max_diff = float(jnp.max(jnp.abs(out - ref)))
    max_ref = float(jnp.max(jnp.abs(ref)))
    assert max_diff <= 0.2 * max_ref + 0.1, (max_diff, max_ref)

    print("KERNEL_OK")
</pallas_src>

<mosaic_0001>
module attributes {stable_mosaic.version = 11 : i64} {
  func.func @kernel(%arg0: i32, %arg1: memref<8x128xf32, #tpu.memory_space<vmem>>, %arg2: memref<1x128xf32, #tpu.memory_space<vmem>>, %arg3: memref<8x128xbf16, #tpu.memory_space<vmem>>) attributes {dimension_semantics = [#tpu.dimension_semantics<parallel>], iteration_bounds = array<i64: 1>, scalar_prefetch = 0 : i64, scratch_operands = 0 : i64, tpu.core_type = #tpu.core_type<tc>, window_params = [{transform_indices = @transform_0, window_bounds = array<i64: 8, 128>}, {pipeline_mode = #tpu.pipeline_mode<synchronous>, transform_indices = @transform_1, window_bounds = array<i64: 1, 128>}, {transform_indices = @transform_2, window_bounds = array<i64: 8, 128>}]} {
    %c0 = arith.constant 0 : index
    %c0_0 = arith.constant 0 : index
    %0 = vector.load %arg1[%c0, %c0_0] : memref<8x128xf32, #tpu.memory_space<vmem>>, vector<8x128xf32>
    %c0_1 = arith.constant 0 : index
    %c0_2 = arith.constant 0 : index
    %1 = vector.load %arg2[%c0_1, %c0_2] : memref<1x128xf32, #tpu.memory_space<vmem>>, vector<1x128xf32>
    %2 = vector.broadcast %1 : vector<1x128xf32> to vector<8x128xf32>
    %3 = arith.addf %0, %2 : vector<8x128xf32>
    %cst = arith.constant 0.000000e+00 : f32
    %4 = vector.broadcast %cst : f32 to vector<8x128xf32>
    %5 = arith.maximumf %3, %4 : vector<8x128xf32>
    %6 = arith.truncf %5 : vector<8x128xf32> to vector<8x128xbf16>
    %c0_3 = arith.constant 0 : index
    %c0_4 = arith.constant 0 : index
    %7 = vector.load %arg3[%c0_3, %c0_4] : memref<8x128xbf16, #tpu.memory_space<vmem>>, vector<8x128xbf16>
    tpu.vector_store %arg3[%c0_3, %c0_4], %6 {strides = array<i32>} : memref<8x128xbf16, #tpu.memory_space<vmem>>, vector<8x128xbf16>,
    return
  }
  func.func @transform_0(%arg0: i32) -> (i32, i32) {
    %c0_i32 = arith.constant 0 : i32
    %c0_i32_0 = arith.constant 0 : i32
    return %arg0, %c0_i32 : i32, i32
  }
  func.func @transform_1(%arg0: i32) -> (i32, i32) {
    %c0_i32 = arith.constant 0 : i32
    %c0_i32_0 = arith.constant 0 : i32
    %c0_i32_1 = arith.constant 0 : i32
    return %c0_i32, %c0_i32_0 : i32, i32
  }
  func.func @transform_2(%arg0: i32) -> (i32, i32) {
    %c0_i32 = arith.constant 0 : i32
    %c0_i32_0 = arith.constant 0 : i32
    return %arg0, %c0_i32 : i32, i32
  }
}

module attributes {stable_mosaic.version = 11 : i64} {
  func.func @kernel(%arg0: i32, %arg1: memref<2x128xf32, #tpu.memory_space<vmem>>, %arg2: memref<1x128xf32, #tpu.memory_space<vmem>>, %arg3: memref<2x128xbf16, #tpu.memory_space<vmem>>) attributes {dimension_semantics = [#tpu.dimension_semantics<parallel>], iteration_bounds = array<i64: 1>, scalar_prefetch = 0 : i64, scratch_operands = 0 : i64, tpu.core_type = #tpu.core_type<tc>, window_params = [{transform_indices = @transform_0, window_bounds = array<i64: 2, 128>}, {pipeline_mode = #tpu.pipeline_mode<synchronous>, transform_indices = @transform_1, window_bounds = array<i64: 1, 128>}, {transform_indices = @transform_2, window_bounds = array<i64: 2, 128>}]} {
    %c0 = arith.constant 0 : index
    %c0_0 = arith.constant 0 : index
    %0 = vector.load %arg1[%c0, %c0_0] : memref<2x128xf32, #tpu.memory_space<vmem>>, vector<2x128xf32>
    %c0_1 = arith.constant 0 : index
    %c0_2 = arith.constant 0 : index
    %1 = vector.load %arg2[%c0_1, %c0_2] : memref<1x128xf32, #tpu.memory_space<vmem>>, vector<1x128xf32>
    %2 = vector.broadcast %1 : vector<1x128xf32> to vector<2x128xf32>
    %3 = arith.addf %0, %2 : vector<2x128xf32>
    %cst = arith.constant 0.000000e+00 : f32
    %4 = vector.broadcast %cst : f32 to vector<2x128xf32>
    %5 = arith.maximumf %3, %4 : vector<2x128xf32>
    %6 = arith.truncf %5 : vector<2x128xf32> to vector<2x128xbf16>
    %c0_3 = arith.constant 0 : index
    %c0_4 = arith.constant 0 : index
    %7 = vector.load %arg3[%c0_3, %c0_4] : memref<2x128xbf16, #tpu.memory_space<vmem>>, vector<2x128xbf16>
    tpu.vector_store %arg3[%c0_3, %c0_4], %6 {strides = array<i32>} : memref<2x128xbf16, #tpu.memory_space<vmem>>, vector<2x128xbf16>,
    return
  }
  func.func @transform_0(%arg0: i32) -> (i32, i32) {
    %c0_i32 = arith.constant 0 : i32
    %c0_i32_0 = arith.constant 0 : i32
    return %arg0, %c0_i32 : i32, i32
  }
  func.func @transform_1(%arg0: i32) -> (i32, i32) {
    %c0_i32 = arith.constant 0 : i32
    %c0_i32_0 = arith.constant 0 : i32
    %c0_i32_1 = arith.constant 0 : i32
    return %c0_i32, %c0_i32_0 : i32, i32
  }
  func.func @transform_2(%arg0: i32) -> (i32, i32) {
    %c0_i32 = arith.constant 0 : i32
    %c0_i32_0 = arith.constant 0 : i32
    return %arg0, %c0_i32 : i32, i32
  }
}

module attributes {stable_mosaic.version = 11 : i64} {
  func.func @kernel(%arg0: i32, %arg1: memref<8x128xf32, #tpu.memory_space<vmem>>, %arg2: memref<8x128xbf16, #tpu.memory_space<vmem>>, %arg3: memref<128x128xbf16, #tpu.memory_space<vmem>>, %arg4: memref<1x128xf32, #tpu.memory_space<vmem>>, %arg5: memref<8x128xbf16, #tpu.memory_space<vmem>>) attributes {dimension_semantics = [#tpu.dimension_semantics<parallel>], iteration_bounds = array<i64: 1>, scalar_prefetch = 0 : i64, scratch_operands = 0 : i64, tpu.core_type = #tpu.core_type<tc>, window_params = [{transform_indices = @transform_0, window_bounds = array<i64: 8, 128>}, {transform_indices = @transform_1, window_bounds = array<i64: 8, 128>}, {pipeline_mode = #tpu.pipeline_mode<synchronous>, transform_indices = @transform_2, window_bounds = array<i64: 128, 128>}, {pipeline_mode = #tpu.pipeline_mode<synchronous>, transform_indices = @transform_3, window_bounds = array<i64: 1, 128>}, {transform_indices = @transform_4, window_bounds = array<i64: 8, 128>}]} {
    %c0 = arith.constant 0 : index
    %c0_0 = arith.constant 0 : index
    %0 = vector.load %arg2[%c0, %c0_0] : memref<8x128xbf16, #tpu.memory_space<vmem>>, vector<8x128xbf16>
    %c0_1 = arith.constant 0 : index
    %c0_2 = arith.constant 0 : index
    %1 = vector.load %arg3[%c0_1, %c0_2] : memref<128x128xbf16, #tpu.memory_space<vmem>>, vector<128x128xbf16>
    %cst = arith.constant dense<0.000000e+00> : vector<8x128xf32>
    %2 = tpu.matmul %0, %1, %cst {dimension_numbers = #tpu.dot_dimension_numbers<[1], [0], [0], [1], [0, 0, 1, 1], [], []>} : vector<8x128xbf16>, vector<128x128xbf16>, vector<8x128xf32> -> vector<8x128xf32>
    %c0_3 = arith.constant 0 : index
    %c0_4 = arith.constant 0 : index
    %3 = vector.load %arg1[%c0_3, %c0_4] : memref<8x128xf32, #tpu.memory_space<vmem>>, vector<8x128xf32>
    %4 = arith.addf %3, %2 : vector<8x128xf32>
    %c0_5 = arith.constant 0 : index
    %c0_6 = arith.constant 0 : index
    %5 = vector.load %arg4[%c0_5, %c0_6] : memref<1x128xf32, #tpu.memory_space<vmem>>, vector<1x128xf32>
    %6 = vector.broadcast %5 : vector<1x128xf32> to vector<8x128xf32>
    %7 = arith.addf %4, %6 : vector<8x128xf32>
    %cst_7 = arith.constant 0.000000e+00 : f32
    %8 = vector.broadcast %cst_7 : f32 to vector<8x128xf32>
    %9 = arith.maximumf %7, %8 : vector<8x128xf32>
    %10 = arith.truncf %9 : vector<8x128xf32> to vector<8x128xbf16>
    %c0_8 = arith.constant 0 : index
    %c0_9 = arith.constant 0 : index
    %11 = vector.load %arg5[%c0_8, %c0_9] : memref<8x128xbf16, #tpu.memory_space<vmem>>, vector<8x128xbf16>
    tpu.vector_store %arg5[%c0_8, %c0_9], %10 {strides = array<i32>} : memref<8x128xbf16, #tpu.memory_space<vmem>>, vector<8x128xbf16>,
    return
  }
  func.func @transform_0(%arg0: i32) -> (i32, i32) {
    %c0_i32 = arith.constant 0 : i32
    %c0_i32_0 = arith.constant 0 : i32
    return %arg0, %c0_i32 : i32, i32
  }
  func.func @transform_1(%arg0: i32) -> (i32, i32) {
    %c0_i32 = arith.constant 0 : i32
    %c0_i32_0 = arith.constant 0 : i32
    return %arg0, %c0_i32 : i32, i32
  }
  func.func @transform_2(%arg0: i32) -> (i32, i32) {
    %c0_i32 = arith.constant 0 : i32
    %c0_i32_0 = arith.constant 0 : i32
    %c0_i32_1 = arith.constant 0 : i32
    return %c0_i32, %c0_i32_0 : i32, i32
  }
  func.func @transform_3(%arg0: i32) -> (i32, i32) {
    %c0_i32 = arith.constant 0 : i32
    %c0_i32_0 = arith.constant 0 : i32
    %c0_i32_1 = arith.constant 0 : i32
    return %c0_i32, %c0_i32_0 : i32, i32
  }
  func.func @transform_4(%arg0: i32) -> (i32, i32) {
    %c0_i32 = arith.constant 0 : i32
    %c0_i32_0 = arith.constant 0 : i32
    return %arg0, %c0_i32 : i32, i32
  }
}

module attributes {stable_mosaic.version = 11 : i64} {
  func.func @kernel(%arg0: i32, %arg1: memref<32x128xf32, #tpu.memory_space<vmem>>, %arg2: memref<32x128xbf16, #tpu.memory_space<vmem>>, %arg3: memref<128x128xbf16, #tpu.memory_space<vmem>>, %arg4: memref<1x128xf32, #tpu.memory_space<vmem>>, %arg5: memref<32x128xf32, #tpu.memory_space<vmem>>) attributes {dimension_semantics = [#tpu.dimension_semantics<parallel>], iteration_bounds = array<i64: 1>, scalar_prefetch = 0 : i64, scratch_operands = 0 : i64, tpu.core_type = #tpu.core_type<tc>, window_params = [{transform_indices = @transform_0, window_bounds = array<i64: 32, 128>}, {transform_indices = @transform_1, window_bounds = array<i64: 32, 128>}, {pipeline_mode = #tpu.pipeline_mode<synchronous>, transform_indices = @transform_2, window_bounds = array<i64: 128, 128>}, {pipeline_mode = #tpu.pipeline_mode<synchronous>, transform_indices = @transform_3, window_bounds = array<i64: 1, 128>}, {transform_indices = @transform_4, window_bounds = array<i64: 32, 128>}]} {
    %c0 = arith.constant 0 : index
    %c0_0 = arith.constant 0 : index
    %0 = vector.load %arg2[%c0, %c0_0] : memref<32x128xbf16, #tpu.memory_space<vmem>>, vector<32x128xbf16>
    %c0_1 = arith.constant 0 : index
    %c0_2 = arith.constant 0 : index
    %1 = vector.load %arg3[%c0_1, %c0_2] : memref<128x128xbf16, #tpu.memory_space<vmem>>, vector<128x128xbf16>
    %cst = arith.constant dense<0.000000e+00> : vector<32x128xf32>
    %2 = tpu.matmul %0, %1, %cst {dimension_numbers = #tpu.dot_dimension_numbers<[1], [0], [0], [1], [0, 0, 1, 1], [], []>} : vector<32x128xbf16>, vector<128x128xbf16>, vector<32x128xf32> -> vector<32x128xf32>
    %c0_3 = arith.constant 0 : index
    %c0_4 = arith.constant 0 : index
    %3 = vector.load %arg1[%c0_3, %c0_4] : memref<32x128xf32, #tpu.memory_space<vmem>>, vector<32x128xf32>
    %4 = arith.addf %3, %2 : vector<32x128xf32>
    %c0_5 = arith.constant 0 : index
    %c0_6 = arith.constant 0 : index
    %5 = vector.load %arg4[%c0_5, %c0_6] : memref<1x128xf32, #tpu.memory_space<vmem>>, vector<1x128xf32>
    %6 = vector.broadcast %5 : vector<1x128xf32> to vector<32x128xf32>
    %7 = arith.addf %4, %6 : vector<32x128xf32>
    %cst_7 = arith.constant 0.000000e+00 : f32
    %8 = vector.broadcast %cst_7 : f32 to vector<32x128xf32>
    %9 = arith.maximumf %7, %8 : vector<32x128xf32>
    %c0_8 = arith.constant 0 : index
    %c0_9 = arith.constant 0 : index
    %10 = vector.load %arg5[%c0_8, %c0_9] : memref<32x128xf32, #tpu.memory_space<vmem>>, vector<32x128xf32>
    tpu.vector_store %arg5[%c0_8, %c0_9], %9 {strides = array<i32>} : memref<32x128xf32, #tpu.memory_space<vmem>>, vector<32x128xf32>,
    return
  }
  func.func @transform_0(%arg0: i32) -> (i32, i32) {
    %c0_i32 = arith.constant 0 : i32
    %c0_i32_0 = arith.constant 0 : i32
    return %arg0, %c0_i32 : i32, i32
  }
  func.func @transform_1(%arg0: i32) -> (i32, i32) {
    %c0_i32 = arith.constant 0 : i32
    %c0_i32_0 = arith.constant 0 : i32
    return %arg0, %c0_i32 : i32, i32
  }
  func.func @transform_2(%arg0: i32) -> (i32, i32) {
    %c0_i32 = arith.constant 0 : i32
    %c0_i32_0 = arith.constant 0 : i32
    %c0_i32_1 = arith.constant 0 : i32
    return %c0_i32, %c0_i32_0 : i32, i32
  }
  func.func @transform_3(%arg0: i32) -> (i32, i32) {
    %c0_i32 = arith.constant 0 : i32
    %c0_i32_0 = arith.constant 0 : i32
    %c0_i32_1 = arith.constant 0 : i32
    return %c0_i32, %c0_i32_0 : i32, i32
  }
  func.func @transform_4(%arg0: i32) -> (i32, i32) {
    %c0_i32 = arith.constant 0 : i32
    %c0_i32_0 = arith.constant 0 : i32
    return %arg0, %c0_i32 : i32, i32
  }
}

</mosaic_0001>

<bundles_post_ra>
// kernel: tile.33
= control target key start
LH: loop header
LB: loop body
LE: loop exit
PB: predicated region body
PF: predicated region fallthrough
CT: control target
= control target key end

     0   :  { %s28_s0 = inlined_call_operand.vmem [shape: f32[8], index: 0, kind: input, shape index: {}]   ;;  %s29_s1 = inlined_call_operand.vmem [shape: f32[16,8], index: 1, kind: output, shape index: {}]  }
   0x1   :  { %v4_v0 = vld [vmem:[%s28_s0] ss:$0 sm:$0xff] }
   0x2   :  { %5 = vst [vmem:[%s29_s1] sm:$0xff] %v4_v0  ;;  %8 = vst [vmem:[%s29_s1 + $0x8] sm:$0xff] %v4_v0 }

// kernel: tile.34
= control target key start
LH: loop header
LB: loop body
LE: loop exit
PB: predicated region body
PF: predicated region fallthrough
CT: control target
= control target key end

     0   :  { %s131_s10 = smov 120   ;;  %s132_s11 = smov 104   ;;  %vm3_vm0 = vcmask 64512   ;;  %vm9_vm1 = vcmask 1048512   ;;  %vm15_vm2 = vcmask 982912   ;;  %vm21_vm3 = vcmask 917312   ;;  %s207_s0 = inlined_call_operand.vmem [shape: f32[16,8], index: 0, kind: input, shape index: {}]   ;;  %s208_s1 = inlined_call_operand.vmem [shape: f32[1,128], index: 1, kind: output, shape index: {}]  }
   0x1   :  { %v101_v0 = vld [vmem:[%s207_s0 + $0xf] sm:$0x1]   ;;  %v103_v1 = vld [vmem:[%s207_s0 + $0xd] sm:$0x1]   ;;  %v102_v2 = vld [vmem:[%s207_s0 + $0xe] sm:$0x1]  }
   0x2   :  { %7 = vrot.lane.b32.xlu0 %v101_v0, %s131_s10  ;;  %19 = vrot.lane.b32.xlu1 %v103_v1, %s132_s11  ;;  %v104_v3 = vld [vmem:[%s207_s0 + $0xc] sm:$0x1]   ;;  %s133_s16 = smov 112   ;;  %s134_s17 = smov 96   ;;  %v105_v4 = vld [vmem:[%s207_s0 + $0xb] sm:$0x1]  }
   0x3   :  { %v106_v5 = vld [vmem:[%s207_s0 + $0xa] sm:$0x1]   ;;  %v2_v6 = vld [vmem:[%s207_s0] sm:$0x1]   ;;  %s135_s24 = smov 88   ;;  %s136_s25 = smov 80  }
   0x4   :  { %4 = vst.msk [vmem:[#allocation0] sm:$0x1] %vm3_vm0, %v2_v6   ;;  %v107_v7 = vld [vmem:[%s207_s0 + $0x9] sm:$0x1]   ;;  %v108_v8 = vld [vmem:[%s207_s0 + $0x8] sm:$0x1]  }
   0x5   :  { %s137_s30 = smov 72   ;;  %s138_s2 = smov 64   ;;  %v109_v9 = vld [vmem:[%s207_s0 + $0x7] sm:$0x1]   ;;  %v110_v10 = vld [vmem:[%s207_s0 + $0x6] sm:$0x1]  }
   0x6   :  { %13 = vrot.lane.b32.xlu0 %v102_v2, %s133_s16  ;;  %25 = vrot.lane.b32.xlu1 %v104_v3, %s134_s17  ;;  %s139_s7 = smov 56   ;;  %s140_s8 = smov 48   ;;  %v111_v11 = vld [vmem:[%s207_s0 + $0x5] sm:$0x1]   ;;  %v112_v12 = vld [vmem:[%s207_s0 + $0x4] sm:$0x1]  }
   0x7   :  { %s141_s13 = smov 40   ;;  %s142_s14 = smov 32   ;;  %v113_v13 = vld [vmem:[%s207_s0 + $0x3] sm:$0x1]   ;;  %v114_v14 = vld [vmem:[%s207_s0 + $0x2] sm:$0x1]  }
   0x8   :  { %s143_s19 = smov 24   ;;  %s144_s20 = smov 16   ;;  %v115_v15 = vld [vmem:[%s207_s0 + $0x1] sm:$0x1]   ;;  %vm27_vm4 = vcmask 851712   ;;  %vm33_vm5 = vcmask 786112  }
   0x9   :  { %s145_s0 = smov 8   ;;  %vm39_vm6 = vcmask 720512   ;;  %vm45_vm7 = vcmask 654912   ;;  %vm51_vm8 = vcmask 589312   ;;  %vm57_vm9 = vcmask 523712  }
   0xa   :  { %31 = vrot.lane.b32.xlu0 %v105_v4, %s135_s24  ;;  %37 = vrot.lane.b32.xlu1 %v106_v5, %s136_s25  ;;  %vm63_vm10 = vcmask 458112   ;;  %vm69_vm11 = vcmask 392512   ;;  %vm75_vm12 = vcmask 326912   ;;  %vm81_vm13 = vcmask 261312  }
   0xb   :  { %vm87_vm14 = vcmask 195712   ;;  %vm93_vm15 = vcmask 130112  }
   0xe   :  { %43 = vrot.lane.b32.xlu0 %v107_v7, %s137_s30  ;;  %49 = vrot.lane.b32.xlu1 %v108_v8, %s138_s2 }
  0x12   :  { %55 = vrot.lane.b32.xlu0 %v109_v9, %s139_s7  ;;  %61 = vrot.lane.b32.xlu1 %v110_v10, %s140_s8 }
  0x16   :  { %67 = vrot.lane.b32.xlu0 %v111_v11, %s141_s13  ;;  %73 = vrot.lane.b32.xlu1 %v112_v12, %s142_s14 }
  0x1a   :  { %79 = vrot.lane.b32.xlu0 %v113_v13, %s143_s19  ;;  %85 = vrot.lane.b32.xlu1 %v114_v14, %s144_s20 }
  0x1e   :  { %91 = vrot.lane.b32.xlu0 %v115_v15, %s145_s0 }
  0x74   :  { %v8_v16 = vpop.permute.xlu0 %7   ;;  %v20_v17 = vpop.permute.xlu1 %19  }
  0x75   :  { %10 = vst.msk [vmem:[#allocation0] sm:$0x1] %vm9_vm1, %v8_v16  }
  0x78   :  { %v14_v18 = vpop.permute.xlu0 %13   ;;  %v26_v19 = vpop.permute.xlu1 %25  }
  0x79   :  { %16 = vst.msk [vmem:[#allocation0] sm:$0x1] %vm15_vm2, %v14_v18  }
  0x7a   :  { %22 = vst.msk [vmem:[#allocation0] sm:$0x1] %vm21_vm3, %v20_v17  }
  0x7b   :  { %28 = vst.msk [vmem:[#allocation0] sm:$0x1] %vm27_vm4, %v26_v19  }
  0x7c   :  { %v32_v20 = vpop.permute.xlu0 %31   ;;  %v38_v21 = vpop.permute.xlu1 %37  }
  0x7d   :  { %34 = vst.msk [vmem:[#allocation0] sm:$0x1] %vm33_vm5, %v32_v20  }
  0x7e   :  { %40 = vst.msk [vmem:[#allocation0] sm:$0x1] %vm39_vm6, %v38_v21  }
  0x80   :  { %v44_v22 = vpop.permute.xlu0 %43   ;;  %v50_v23 = vpop.permute.xlu1 %49  }
  0x81   :  { %46 = vst.msk [vmem:[#allocation0] sm:$0x1] %vm45_vm7, %v44_v22  }
  0x82   :  { %52 = vst.msk [vmem:[#allocation0] sm:$0x1] %vm51_vm8, %v50_v23  }
  0x84   :  { %v56_v24 = vpop.permute.xlu0 %55   ;;  %v62_v25 = vpop.permute.xlu1 %61  }
  0x85   :  { %58 = vst.msk [vmem:[#allocation0] sm:$0x1] %vm57_vm9, %v56_v24  }
  0x86   :  { %64 = vst.msk [vmem:[#allocation0] sm:$0x1] %vm63_vm10, %v62_v25  }
  0x88   :  { %v68_v26 = vpop.permute.xlu0 %67   ;;  %v74_v27 = vpop.permute.xlu1 %73  }
  0x89   :  { %70 = vst.msk [vmem:[#allocation0] sm:$0x1] %vm69_vm11, %v68_v26  }
  0x8a   :  { %76 = vst.msk [vmem:[#allocation0] sm:$0x1] %vm75_vm12, %v74_v27  }
  0x8c   :  { %v80_v28 = vpop.permute.xlu0 %79   ;;  %v86_v29 = vpop.permute.xlu1 %85  }
  0x8d   :  { %82 = vst.msk [vmem:[#allocation0] sm:$0x1] %vm81_vm13, %v80_v28  }
  0x8e   :  { %88 = vst.msk [vmem:[#allocation0] sm:$0x1] %vm87_vm14, %v86_v29  }
  0x90   :  { %v92_v30 = vpop.permute.xlu0 %91  }
  0x91   :  { %94 = vst.msk [vmem:[#allocation0] sm:$0x1] %vm93_vm15, %v92_v30  }
  0x98   :  { %v98_v31 = vld [vmem:[#allocation0] sm:$0x1] }
  0x99   :  { %100 = vst [vmem:[%s208_s1] sm:$0x1] %v98_v31 }

// kernel: hourglass_forward.6
= control target key start
LH: loop header
LB: loop body
LE: loop exit
PB: predicated region body
PF: predicated region fallthrough
CT: control target
= control target key end

     0   :  { %s52_s0 = inlined_call_operand.vmem [shape: f32[8,128], index: 0, kind: input, shape index: {}]   ;;  %s53_s1 = inlined_call_operand.vmem [shape: f32[1,128], index: 1, kind: input, shape index: {}]   ;;  %s54_s2 = inlined_call_operand.vmem [shape: bf16[8,128], index: 2, kind: output, shape index: {}]  }
   0x1   :  { %v11_v0 = vld [vmem:[%s52_s0] sm:$0xff] }
   0x2   :  { %v27_v1 = vld [vmem:[%s53_s1] ss:$0 sm:$0xff] }
   0x3   :  { %v19_v2 = vadd.f32 %v27_v1, %v11_v0 }
   0x5   :  { %v20_v3 = vmax.f32 %v19_v2, 0.0 }
   0x7   :  { %v21_v4 = vpack.c.bf16 %v20_v3, %v20_v3 }
   0x9   :  { %22 = vst [vmem:[%s54_s2] sm:$0xf] %v21_v4 }

// kernel: tile.43
= control target key start
LH: loop header
LB: loop body
LE: loop exit
PB: predicated region body
PF: predicated region fallthrough
CT: control target
= control target key end

     0   :  { %s22_s0 = inlined_call_operand.vmem [shape: f32[16], index: 0, kind: input, shape index: {}]   ;;  %s23_s1 = inlined_call_operand.vmem [shape: f32[8,16], index: 1, kind: output, shape index: {}]  }
   0x1   :  { %v4_v0 = vld [vmem:[%s22_s0] ss:$0 sm:$0xff] }
   0x2   :  { %5 = vst [vmem:[%s23_s1] sm:$0xff] %v4_v0 }

// kernel: tile.44
= control target key start
LH: loop header
LB: loop body
LE: loop exit
PB: predicated region body
PF: predicated region fallthrough
CT: control target
= control target key end

     0   :  { %s67_s10 = smov 112   ;;  %s68_s11 = smov 80   ;;  %vm3_vm0 = vcmask 130048   ;;  %vm9_vm1 = vcmask 1048448   ;;  %vm15_vm2 = vcmask 917248   ;;  %vm21_vm3 = vcmask 786048   ;;  %s111_s0 = inlined_call_operand.vmem [shape: f32[8,16], index: 0, kind: input, shape index: {}]   ;;  %s112_s1 = inlined_call_operand.vmem [shape: f32[1,128], index: 1, kind: output, shape index: {}]  }
   0x1   :  { %v53_v0 = vld [vmem:[%s111_s0 + $0x7] sm:$0x1]   ;;  %v55_v1 = vld [vmem:[%s111_s0 + $0x5] sm:$0x1]   ;;  %v54_v2 = vld [vmem:[%s111_s0 + $0x6] sm:$0x1]  }
   0x2   :  { %7 = vrot.lane.b32.xlu0 %v53_v0, %s67_s10  ;;  %19 = vrot.lane.b32.xlu1 %v55_v1, %s68_s11  ;;  %v56_v3 = vld [vmem:[%s111_s0 + $0x4] sm:$0x1]   ;;  %v2_v4 = vld [vmem:[%s111_s0] sm:$0x1]   ;;  %s69_s18 = smov 96   ;;  %s70_s19 = smov 64  }
   0x3   :  { %4 = vst.msk [vmem:[#allocation0] sm:$0x1] %vm3_vm0, %v2_v4   ;;  %v57_v5 = vld [vmem:[%s111_s0 + $0x3] sm:$0x1]   ;;  %v58_v6 = vld [vmem:[%s111_s0 + $0x2] sm:$0x1]  }
   0x4   :  { %s71_s24 = smov 48   ;;  %s72_s25 = smov 32   ;;  %v59_v7 = vld [vmem:[%s111_s0 + $0x1] sm:$0x1]   ;;  %vm27_vm4 = vcmask 654848   ;;  %vm33_vm5 = vcmask 523648  }
   0x5   :  { %s73_s0 = smov 16   ;;  %vm39_vm6 = vcmask 392448   ;;  %vm45_vm7 = vcmask 261248  }
   0x6   :  { %13 = vrot.lane.b32.xlu0 %v54_v2, %s69_s18  ;;  %25 = vrot.lane.b32.xlu1 %v56_v3, %s70_s19 }
   0xa   :  { %31 = vrot.lane.b32.xlu0 %v57_v5, %s71_s24  ;;  %37 = vrot.lane.b32.xlu1 %v58_v6, %s72_s25 }
   0xe   :  { %43 = vrot.lane.b32.xlu0 %v59_v7, %s73_s0 }
  0x74   :  { %v8_v8 = vpop.permute.xlu0 %7   ;;  %v20_v9 = vpop.permute.xlu1 %19  }
  0x75   :  { %10 = vst.msk [vmem:[#allocation0] sm:$0x1] %vm9_vm1, %v8_v8  }
  0x78   :  { %v14_v10 = vpop.permute.xlu0 %13   ;;  %v26_v11 = vpop.permute.xlu1 %25  }
  0x79   :  { %16 = vst.msk [vmem:[#allocation0] sm:$0x1] %vm15_vm2, %v14_v10  }
  0x7a   :  { %22 = vst.msk [vmem:[#allocation0] sm:$0x1] %vm21_vm3, %v20_v9  }
  0x7b   :  { %28 = vst.msk [vmem:[#allocation0] sm:$0x1] %vm27_vm4, %v26_v11  }
  0x7c   :  { %v32_v12 = vpop.permute.xlu0 %31   ;;  %v38_v13 = vpop.permute.xlu1 %37  }
  0x7d   :  { %34 = vst.msk [vmem:[#allocation0] sm:$0x1] %vm33_vm5, %v32_v12  }
  0x7e   :  { %40 = vst.msk [vmem:[#allocation0] sm:$0x1] %vm39_vm6, %v38_v13  }
  0x80   :  { %v44_v14 = vpop.permute.xlu0 %43  }
  0x81   :  { %46 = vst.msk [vmem:[#allocation0] sm:$0x1] %vm45_vm7, %v44_v14  }
  0x88   :  { %v50_v15 = vld [vmem:[#allocation0] sm:$0x1] }
  0x89   :  { %52 = vst [vmem:[%s112_s1] sm:$0x1] %v50_v15 }

// kernel: reverse
= control target key start
LH: loop header
LB: loop body
LE: loop exit
PB: predicated region body
PF: predicated region fallthrough
CT: control target
= control target key end

     0   :  { %s656_s0 = inlined_call_operand.vmem [shape: bf16[16,16,3,3,3], index: 0, kind: input, shape index: {}]   ;;  %s657_s1 = inlined_call_operand.vmem [shape: bf16[16,16,3,3,3], index: 1, kind: output, shape index: {}]  }
   0x1   :  { %v378_v0 = vld [vmem:[%s656_s0 + $0xd0] sm:$0xff]   ;;  %v379_v1 = vld [vmem:[%s656_s0 + $0x88] sm:$0xff]   ;;  %v381_v2 = vld [vmem:[%s656_s0 + $0x40] sm:$0xff]  }
   0x2   :  { %7 = vst [vmem:[%s657_s1] sm:$0xff] %v378_v0   ;;  %380 = vst [vmem:[%s657_s1 + $0x48] sm:$0xff] %v379_v1   ;;  %v383_v3 = vld [vmem:[%s656_s0 + $0xb8] sm:$0xff]   ;;  %v385_v4 = vld [vmem:[%s656_s0 + $0x70] sm:$0xff]  }
   0x3   :  { %382 = vst [vmem:[%s657_s1 + $0x90] sm:$0xff] %v381_v2   ;;  %v387_v5 = vld [vmem:[%s656_s0 + $0x28] sm:$0xff]   ;;  %384 = vst [vmem:[%s657_s1 + $0x18] sm:$0xff] %v383_v3   ;;  %v389_v6 = vld [vmem:[%s656_s0 + $0xa0] sm:$0xff]  }
   0x4   :  { %386 = vst [vmem:[%s657_s1 + $0x60] sm:$0xff] %v385_v4   ;;  %388 = vst [vmem:[%s657_s1 + $0xa8] sm:$0xff] %v387_v5   ;;  %v391_v7 = vld [vmem:[%s656_s0 + $0x58] sm:$0xff]   ;;  %v393_v8 = vld [vmem:[%s656_s0 + $0x10] sm:$0xff]  }
   0x5   :  { %390 = vst [vmem:[%s657_s1 + $0x30] sm:$0xff] %v389_v6   ;;  %392 = vst [vmem:[%s657_s1 + $0x78] sm:$0xff] %v391_v7   ;;  %v395_v9 = vld [vmem:[%s656_s0 + $0xc8] sm:$0xff]   ;;  %v397_v10 = vld [vmem:[%s656_s0 + $0x80] sm:$0xff]  }
   0x6   :  { %394 = vst [vmem:[%s657_s1 + $0xc0] sm:$0xff] %v393_v8   ;;  %v399_v11 = vld [vmem:[%s656_s0 + $0x38] sm:$0xff]   ;;  %396 = vst [vmem:[%s657_s1 + $0x8] sm:$0xff] %v395_v9   ;;  %v401_v12 = vld [vmem:[%s656_s0 + $0xb0] sm:$0xff]  }
   0x7   :  { %398 = vst [vmem:[%s657_s1 + $0x50] sm:$0xff] %v397_v10   ;;  %400 = vst [vmem:[%s657_s1 + $0x98] sm:$0xff] %v399_v11   ;;  %v403_v13 = vld [vmem:[%s656_s0 + $0x68] sm:$0xff]   ;;  %v405_v14 = vld [vmem:[%s656_s0 + $0x20] sm:$0xff]  }
   0x8   :  { %402 = vst [vmem:[%s657_s1 + $0x20] sm:$0xff] %v401_v12   ;;  %404 = vst [vmem:[%s657_s1 + $0x68] sm:$0xff] %v403_v13   ;;  %v407_v15 = vld [vmem:[%s656_s0 + $0x98] sm:$0xff]   ;;  %v409_v16 = vld [vmem:[%s656_s0 + $0x50] sm:$0xff]  }
   0x9   :  { %406 = vst [vmem:[%s657_s1 + $0xb0] sm:$0xff] %v405_v14   ;;  %v411_v17 = vld [vmem:[%s656_s0 + $0x8] sm:$0xff]   ;;  %408 = vst [vmem:[%s657_s1 + $0x38] sm:$0xff] %v407_v15   ;;  %v413_v18 = vld [vmem:[%s656_s0 + $0xc0] sm:$0xff]  }
   0xa   :  { %410 = vst [vmem:[%s657_s1 + $0x80] sm:$0xff] %v409_v16   ;;  %412 = vst [vmem:[%s657_s1 + $0xc8] sm:$0xff] %v411_v17   ;;  %v415_v19 = vld [vmem:[%s656_s0 + $0x78] sm:$0xff]   ;;  %v417_v20 = vld [vmem:[%s656_s0 + $0x30] sm:$0xff]  }
   0xb   :  { %414 = vst [vmem:[%s657_s1 + $0x10] sm:$0xff] %v413_v18   ;;  %416 = vst [vmem:[%s657_s1 + $0x58] sm:$0xff] %v415_v19   ;;  %v419_v21 = vld [vmem:[%s656_s0 + $0xa8] sm:$0xff]   ;;  %v421_v22 = vld [vmem:[%s656_s0 + $0x60] sm:$0xff]  }
   0xc   :  { %418 = vst [vmem:[%s657_s1 + $0xa0] sm:$0xff] %v417_v20   ;;  %v423_v23 = vld [vmem:[%s656_s0 + $0x18] sm:$0xff]   ;;  %420 = vst [vmem:[%s657_s1 + $0x28] sm:$0xff] %v419_v21   ;;  %v425_v24 = vld [vmem:[%s656_s0 + $0x90] sm:$0xff]  }
   0xd   :  { %422 = vst [vmem:[%s657_s1 + $0x70] sm:$0xff] %v421_v22   ;;  %424 = vst [vmem:[%s657_s1 + $0xb8] sm:$0xff] %v423_v23   ;;  %v427_v25 = vld [vmem:[%s656_s0 + $0x48] sm:$0xff]   ;;  %v183_v26 = vld [vmem:[%s656_s0] sm:$0xff]  }
   0xe   :  { %426 = vst [vmem:[%s657_s1 + $0x40] sm:$0xff] %v425_v24   ;;  %428 = vst [vmem:[%s657_s1 + $0x88] sm:$0xff] %v427_v25  }
   0xf   :  { %429 = vst [vmem:[%s657_s1 + $0xd0] sm:$0xff] %v183_v26  }

// kernel: hourglass_forward.8
= control target key start
LH: loop header
LB: loop body
LE: loop exit
PB: predicated region body
PF: predicated region fallthrough
CT: control target
= control target key end

     0   :  { %s52_s0 = inlined_call_operand.vmem [shape: f32[2,128], index: 0, kind: input, shape index: {}]   ;;  %s53_s1 = inlined_call_operand.vmem [shape: f32[1,128], index: 1, kind: input, shape index: {}]   ;;  %s54_s2 = inlined_call_operand.vmem [shape: bf16[2,128], index: 2, kind: output, shape index: {}]  }
   0x1   :  { %v11_v0 = vld [vmem:[%s52_s0] sm:$0x3] }
   0x2   :  { %v27_v1 = vld [vmem:[%s53_s1] ss:$0 sm:$0xff] }
   0x3   :  { %v19_v2 = vadd.f32 %v27_v1, %v11_v0 }
   0x5   :  { %v20_v3 = vmax.f32 %v19_v2, 0.0 }
   0x7   :  { %v21_v4 = vpack.c.bf16 %v20_v3, %v20_v3 }
   0x9   :  { %22 = vst [vmem:[%s54_s2] sm:$0x1] %v21_v4 }

// kernel: reverse.1
= control target key start
LH: loop header
LB: loop body
LE: loop exit
PB: predicated region body
PF: predicated region fallthrough
CT: control target
= control target key end

     0   :  { %s413_s0 = inlined_call_operand.vmem [shape: bf16[16,8,3,3,3], index: 0, kind: input, shape index: {}]   ;;  %s414_s1 = inlined_call_operand.vmem [shape: bf16[16,8,3,3,3], index: 1, kind: output, shape index: {}]  }
   0x1   :  { %v189_v0 = vld [vmem:[%s413_s0 + $0x68] sm:$0xf]  ;;  %v190_v1 = vld [vmem:[%s413_s0 + $0x44] sm:$0xf]  ;;  %v192_v2 = vld [vmem:[%s413_s0 + $0x20] sm:$0xf] }
   0x2   :  { %7 = vst [vmem:[%s414_s1] sm:$0xf] %v189_v0  ;;  %191 = vst [vmem:[%s414_s1 + $0x24] sm:$0xf] %v190_v1  ;;  %v194_v3 = vld [vmem:[%s413_s0 + $0x5c] sm:$0xf] }
   0x3   :  { %193 = vst [vmem:[%s414_s1 + $0x48] sm:$0xf] %v192_v2  ;;  %v196_v4 = vld [vmem:[%s413_s0 + $0x38] sm:$0xf]  ;;  %v198_v5 = vld [vmem:[%s413_s0 + $0x14] sm:$0xf] }
   0x4   :  { %195 = vst [vmem:[%s414_s1 + $0xc] sm:$0xf] %v194_v3  ;;  %197 = vst [vmem:[%s414_s1 + $0x30] sm:$0xf] %v196_v4  ;;  %v200_v6 = vld [vmem:[%s413_s0 + $0x50] sm:$0xf] }
   0x5   :  { %199 = vst [vmem:[%s414_s1 + $0x54] sm:$0xf] %v198_v5  ;;  %v202_v7 = vld [vmem:[%s413_s0 + $0x2c] sm:$0xf]  ;;  %v204_v8 = vld [vmem:[%s413_s0 + $0x8] sm:$0xf] }
   0x6   :  { %201 = vst [vmem:[%s414_s1 + $0x18] sm:$0xf] %v200_v6  ;;  %203 = vst [vmem:[%s414_s1 + $0x3c] sm:$0xf] %v202_v7  ;;  %v206_v9 = vld [vmem:[%s413_s0 + $0x64] sm:$0xf] }
   0x7   :  { %205 = vst [vmem:[%s414_s1 + $0x60] sm:$0xf] %v204_v8  ;;  %v208_v10 = vld [vmem:[%s413_s0 + $0x40] sm:$0xf]  ;;  %v210_v11 = vld [vmem:[%s413_s0 + $0x1c] sm:$0xf] }
   0x8   :  { %207 = vst [vmem:[%s414_s1 + $0x4] sm:$0xf] %v206_v9  ;;  %209 = vst [vmem:[%s414_s1 + $0x28] sm:$0xf] %v208_v10  ;;  %v212_v12 = vld [vmem:[%s413_s0 + $0x58] sm:$0xf] }
   0x9   :  { %211 = vst [vmem:[%s414_s1 + $0x4c] sm:$0xf] %v210_v11  ;;  %v214_v13 = vld [vmem:[%s413_s0 + $0x34] sm:$0xf]  ;;  %v216_v14 = vld [vmem:[%s413_s0 + $0x10] sm:$0xf] }
   0xa   :  { %213 = vst [vmem:[%s414_s1 + $0x10] sm:$0xf] %v212_v12  ;;  %215 = vst [vmem:[%s414_s1 + $0x34] sm:$0xf] %v214_v13  ;;  %v218_v15 = vld [vmem:[%s413_s0 + $0x4c] sm:$0xf] }
   0xb   :  { %217 = vst [vmem:[%s414_s1 + $0x58] sm:$0xf] %v216_v14  ;;  %v220_v16 = vld [vmem:[%s413_s0 + $0x28] sm:$0xf]  ;;  %v222_v17 = vld [vmem:[%s413_s0 + $0x4] sm:$0xf] }
   0xc   :  { %219 = vst [vmem:[%s414_s1 + $0x1c] sm:$0xf] %v218_v15  ;;  %221 = vst [vmem:[%s414_s1 + $0x40] sm:$0xf] %v220_v16  ;;  %v224_v18 = vld [vmem:[%s413_s0 + $0x60] sm:$0xf] }
   0xd   :  { %223 = vst [vmem:[%s414_s1 + $0x64] sm:$0xf] %v222_v17  ;;  %v226_v19 = vld [vmem:[%s413_s0 + $0x3c] sm:$0xf]  ;;  %v228_v20 = vld [vmem:[%s413_s0 + $0x18] sm:$0xf] }
   0xe   :  { %225 = vst [vmem:[%s414_s1 + $0x8] sm:$0xf] %v224_v18  ;;  %227 = vst [vmem:[%s414_s1 + $0x2c] sm:$0xf] %v226_v19  ;;  %v230_v21 = vld [vmem:[%s413_s0 + $0x54] sm:$0xf] }
   0xf   :  { %229 = vst [vmem:[%s414_s1 + $0x50] sm:$0xf] %v228_v20  ;;  %v232_v22 = vld [vmem:[%s413_s0 + $0x30] sm:$0xf]  ;;  %v234_v23 = vld [vmem:[%s413_s0 + $0xc] sm:$0xf] }
  0x10   :  { %231 = vst [vmem:[%s414_s1 + $0x14] sm:$0xf] %v230_v21  ;;  %233 = vst [vmem:[%s414_s1 + $0x38] sm:$0xf] %v232_v22  ;;  %v236_v24 = vld [vmem:[%s413_s0 + $0x48] sm:$0xf] }
  0x11   :  { %235 = vst [vmem:[%s414_s1 + $0x5c] sm:$0xf] %v234_v23  ;;  %v238_v25 = vld [vmem:[%s413_s0 + $0x24] sm:$0xf]  ;;  %v183_v26 = vld [vmem:[%s413_s0] sm:$0xf] }
  0x12   :  { %237 = vst [vmem:[%s414_s1 + $0x20] sm:$0xf] %v236_v24  ;;  %239 = vst [vmem:[%s414_s1 + $0x44] sm:$0xf] %v238_v25 }
  0x13   :  { %240 = vst [vmem:[%s414_s1 + $0x68] sm:$0xf] %v183_v26 }

// kernel: hourglass_forward.10
= control target key start
LH: loop header
LB: loop body
LE: loop exit
PB: predicated region body
PF: predicated region fallthrough
CT: control target
= control target key end

     0   :  { %v188_v0 = vmov 0.0   ;;  %vm189_vm0 = vmmov 0   ;;  %s251_s2 = inlined_call_operand.vmem [shape: bf16[128,128], index: 2, kind: input, shape index: {}]   ;;  %s252_s1 = inlined_call_operand.vmem [shape: bf16[8,128], index: 1, kind: input, shape index: {}]   ;;  %s253_s0 = inlined_call_operand.vmem [shape: f32[8,128], index: 0, kind: input, shape index: {}]   ;;  %s254_s3 = inlined_call_operand.vmem [shape: f32[1,128], index: 3, kind: input, shape index: {}]   ;;  %s255_s4 = inlined_call_operand.vmem [shape: bf16[8,128], index: 4, kind: output, shape index: {}]  }
   0x1   :  { %158 = vmatprep.subr.bf16.mxu0 %v188_v0  ;;  %v180_v1 = vld [vmem:[%s251_s2] sm:$0xff]   ;;  %174 = vmatprep.mubr.msk.bf16.mxu0 %vm189_vm0, %v188_v0  ;;  %v181_v2 = vld [vmem:[%s251_s2 + $0x8] sm:$0xff]   ;;  %v182_v3 = vld [vmem:[%s251_s2 + $0x10] sm:$0xff]  }
   0x2   :  { %159 = vmatpush3.bf16.msra.mxu0 %v180_v1  ;;  %v183_v4 = vld [vmem:[%s251_s2 + $0x18] sm:$0xff]   ;;  %v184_v5 = vld [vmem:[%s251_s2 + $0x20] sm:$0xff]   ;;  %v185_v6 = vld [vmem:[%s251_s2 + $0x28] sm:$0xff]  }
   0x3   :  { %160 = vmatprep.subr.bf16.mxu0 %v188_v0  ;;  %v186_v7 = vld [vmem:[%s251_s2 + $0x30] sm:$0xff]   ;;  %v187_v8 = vld [vmem:[%s251_s2 + $0x38] sm:$0xff]   ;;  %v18_v9 = vld [vmem:[%s252_s1] sm:$0xf] }
   0x4   :  { %v123_v10 = vld [vmem:[%s253_s0] sm:$0xff] }
   0x5   :  { %v148_v12 = vld [vmem:[%s254_s3] ss:$0 sm:$0xff] }
   0x6   :  { %161 = vmatpush3.bf16.msra.mxu0 %v181_v2 }
   0x7   :  { %162 = vmatprep.subr.bf16.mxu0 %v188_v0 }
   0xa   :  { %163 = vmatpush3.bf16.msra.mxu0 %v182_v3 }
   0xb   :  { %164 = vmatprep.subr.bf16.mxu0 %v188_v0 }
   0xe   :  { %165 = vmatpush3.bf16.msra.mxu0 %v183_v4 }
   0xf   :  { %166 = vmatprep.subr.bf16.mxu0 %v188_v0 }
  0x12   :  { %167 = vmatpush3.bf16.msra.mxu0 %v184_v5 }
  0x13   :  { %168 = vmatprep.subr.bf16.mxu0 %v188_v0 }
  0x16   :  { %169 = vmatpush3.bf16.msra.mxu0 %v185_v6 }
  0x17   :  { %170 = vmatprep.subr.bf16.mxu0 %v188_v0 }
  0x1a   :  { %171 = vmatpush3.bf16.msra.mxu0 %v186_v7 }
  0x1b   :  { %172 = vmatprep.subr.bf16.mxu0 %v188_v0 }
  0x1e   :  { %173 = vmatpush3.bf16.msra.mxu0 %v187_v8 }
  0x21   :  { %175 = vmatmul.mubr.bf16.vlgmr.msra.gmra.mrb[0].mxu0 %v18_v9 }
  0xf4   :  { %v117_v11 = vpop.f32.mrb[0].mxu0 }
  0xf5   :  { %v124_v13 = vadd.f32 %v123_v10, %v117_v11  ;;  %v176_v14 = vpop.f32.mrb[1].mxu0 }
  0xf6   :  { %v120_v15 = vpop.f32.mrb[2].mxu0 }
  0xf7   :  { %v132_v16 = vadd.f32 %v148_v12, %v124_v13  ;;  %v177_v17 = vpop.f32.mrb[3].mxu0 }
  0xf9   :  { %v133_v18 = vmax.f32 %v132_v16, 0.0 }
  0xfb   :  { %v134_v19 = vpack.c.bf16 %v133_v18, %v133_v18 }
  0xfd   :  { %135 = vst [vmem:[%s255_s4] sm:$0xf] %v134_v19 }

// kernel: tile.58
= control target key start
LH: loop header
LB: loop body
LE: loop exit
PB: predicated region body
PF: predicated region fallthrough
CT: control target
= control target key end

     0   :  { %s40_s0 = inlined_call_operand.vmem [shape: f32[4], index: 0, kind: input, shape index: {}]   ;;  %s41_s1 = inlined_call_operand.vmem [shape: f32[32,4], index: 1, kind: output, shape index: {}]  }
   0x1   :  { %v4_v0 = vld [vmem:[%s40_s0] ss:$0 sm:$0xff] }
   0x2   :  { %5 = vst [vmem:[%s41_s1] sm:$0xff] %v4_v0  ;;  %12 = vst [vmem:[%s41_s1 + $0x8] sm:$0xff] %v4_v0 }
   0x3   :  { %13 = vst [vmem:[%s41_s1 + $0x10] sm:$0xff] %v4_v0  ;;  %14 = vst [vmem:[%s41_s1 + $0x18] sm:$0xff] %v4_v0 }

// kernel: tile.59
= control target key start
LH: loop header
LB: loop body
LE: loop exit
PB: predicated region body
PF: predicated region fallthrough
CT: control target
= control target key end

     0   :  { %s259_s10 = smov 124   ;;  %s260_s11 = smov 116   ;;  %vm3_vm0 = vcmask 31744   ;;  %vm9_vm1 = vcmask 1048544   ;;  %vm15_vm2 = vcmask 1015744   ;;  %vm21_vm3 = vcmask 982944   ;;  %s399_s0 = inlined_call_operand.vmem [shape: f32[32,4], index: 0, kind: input, shape index: {}]   ;;  %s400_s1 = inlined_call_operand.vmem [shape: f32[1,128], index: 1, kind: output, shape index: {}]  }
   0x1   :  { %v197_v0 = vld [vmem:[%s399_s0 + $0x1f] sm:$0x1]   ;;  %v199_v1 = vld [vmem:[%s399_s0 + $0x1d] sm:$0x1]   ;;  %v198_v2 = vld [vmem:[%s399_s0 + $0x1e] sm:$0x1]  }
   0x2   :  { %7 = vrot.lane.b32.xlu0 %v197_v0, %s259_s10  ;;  %19 = vrot.lane.b32.xlu1 %v199_v1, %s260_s11  ;;  %v200_v3 = vld [vmem:[%s399_s0 + $0x1c] sm:$0x1]   ;;  %s261_s16 = smov 120   ;;  %s262_s17 = smov 112   ;;  %v201_v4 = vld [vmem:[%s399_s0 + $0x1b] sm:$0x1]  }
   0x3   :  { %v202_v5 = vld [vmem:[%s399_s0 + $0x1a] sm:$0x1]   ;;  %s263_s22 = smov 108   ;;  %s264_s23 = smov 104   ;;  %v203_v6 = vld [vmem:[%s399_s0 + $0x19] sm:$0x1]  }
   0x4   :  { %v204_v7 = vld [vmem:[%s399_s0 + $0x18] sm:$0x1]   ;;  %s265_s28 = smov 100   ;;  %s266_s29 = smov 96   ;;  %v205_v8 = vld [vmem:[%s399_s0 + $0x17] sm:$0x1]  }
   0x5   :  { %v206_v9 = vld [vmem:[%s399_s0 + $0x16] sm:$0x1]   ;;  %v2_v10 = vld [vmem:[%s399_s0] sm:$0x1]   ;;  %s267_s7 = smov 92   ;;  %s268_s8 = smov 88  }
   0x6   :  { %13 = vrot.lane.b32.xlu0 %v198_v2, %s261_s16  ;;  %25 = vrot.lane.b32.xlu1 %v200_v3, %s262_s17  ;;  %4 = vst.msk [vmem:[#allocation0] sm:$0x1] %vm3_vm0, %v2_v10   ;;  %v207_v11 = vld [vmem:[%s399_s0 + $0x15] sm:$0x1]   ;;  %v208_v12 = vld [vmem:[%s399_s0 + $0x14] sm:$0x1]  }
   0x7   :  { %s269_s13 = smov 84   ;;  %s270_s14 = smov 80   ;;  %v209_v13 = vld [vmem:[%s399_s0 + $0x13] sm:$0x1]   ;;  %v210_v14 = vld [vmem:[%s399_s0 + $0x12] sm:$0x1]  }
   0x8   :  { %s271_s19 = smov 76   ;;  %s272_s20 = smov 72   ;;  %v211_v15 = vld [vmem:[%s399_s0 + $0x11] sm:$0x1]   ;;  %v212_v16 = vld [vmem:[%s399_s0 + $0x10] sm:$0x1]  }
   0x9   :  { %s273_s25 = smov 68   ;;  %s274_s26 = smov 64   ;;  %v213_v17 = vld [vmem:[%s399_s0 + $0xf] sm:$0x1]   ;;  %v214_v18 = vld [vmem:[%s399_s0 + $0xe] sm:$0x1]  }
   0xa   :  { %31 = vrot.lane.b32.xlu0 %v201_v4, %s263_s22  ;;  %37 = vrot.lane.b32.xlu1 %v202_v5, %s264_s23  ;;  %s275_s2 = smov 60   ;;  %s276_s3 = smov 56   ;;  %v215_v19 = vld [vmem:[%s399_s0 + $0xd] sm:$0x1]   ;;  %v216_v20 = vld [vmem:[%s399_s0 + $0xc] sm:$0x1]  }
   0xb   :  { %s278_s9 = smov 48   ;;  %v217_v21 = vld [vmem:[%s399_s0 + $0xb] sm:$0x1]   ;;  %v218_v22 = vld [vmem:[%s399_s0 + $0xa] sm:$0x1]   ;;  %s280_s15 = smov 40  }
   0xc   :  { %v219_v23 = vld [vmem:[%s399_s0 + $0x9] sm:$0x1]   ;;  %v220_v24 = vld [vmem:[%s399_s0 + $0x8] sm:$0x1]   ;;  %s282_s21 = smov 32   ;;  %s284_s27 = smov 24  }
   0xd   :  { %v221_v25 = vld [vmem:[%s399_s0 + $0x7] sm:$0x1]   ;;  %v222_v26 = vld [vmem:[%s399_s0 + $0x6] sm:$0x1]   ;;  %v223_v27 = vld [vmem:[%s399_s0 + $0x5] sm:$0x1]  }
   0xe   :  { %43 = vrot.lane.b32.xlu0 %v203_v6, %s265_s28  ;;  %49 = vrot.lane.b32.xlu1 %v204_v7, %s266_s29  ;;  %v224_v28 = vld [vmem:[%s399_s0 + $0x4] sm:$0x1]   ;;  %s286_s4 = smov 16   ;;  %v225_v29 = vld [vmem:[%s399_s0 + $0x3] sm:$0x1]   ;;  %s288_s10 = smov 8  }
   0xf   :  { %v226_v30 = vld [vmem:[%s399_s0 + $0x2] sm:$0x1]   ;;  %v227_v31 = vld [vmem:[%s399_s0 + $0x1] sm:$0x1]   ;;  %s289_s0 = smov 4   ;;  %vm27_vm4 = vcmask 950144  }
  0x10   :  { %vm33_vm5 = vcmask 917344   ;;  %vm39_vm6 = vcmask 884544   ;;  %vm45_vm7 = vcmask 851744   ;;  %vm51_vm8 = vcmask 818944  }
  0x11   :  { %vm57_vm9 = vcmask 786144   ;;  %vm63_vm10 = vcmask 753344   ;;  %vm69_vm11 = vcmask 720544   ;;  %vm75_vm12 = vcmask 687744  }
  0x12   :  { %55 = vrot.lane.b32.xlu0 %v205_v8, %s267_s7  ;;  %61 = vrot.lane.b32.xlu1 %v206_v9, %s268_s8  ;;  %s277_s8 = smov 52   ;;  %vm81_vm13 = vcmask 654944   ;;  %vm87_vm14 = vcmask 622144   ;;  %vm93_vm15 = vcmask 589344   ;;  %vm99_vm0 = vcmask 556544  }
  0x16   :  { %67 = vrot.lane.b32.xlu0 %v207_v11, %s269_s13  ;;  %73 = vrot.lane.b32.xlu1 %v208_v12, %s270_s14  ;;  %s279_s14 = smov 44  }
  0x1a   :  { %79 = vrot.lane.b32.xlu0 %v209_v13, %s271_s19  ;;  %85 = vrot.lane.b32.xlu1 %v210_v14, %s272_s20  ;;  %s281_s20 = smov 36  }
  0x1e   :  { %91 = vrot.lane.b32.xlu0 %v211_v15, %s273_s25  ;;  %97 = vrot.lane.b32.xlu1 %v212_v16, %s274_s26  ;;  %s283_s26 = smov 28  }
  0x22   :  { %103 = vrot.lane.b32.xlu0 %v213_v17, %s275_s2  ;;  %109 = vrot.lane.b32.xlu1 %v214_v18, %s276_s3  ;;  %s285_s3 = smov 20  }
  0x26   :  { %115 = vrot.lane.b32.xlu0 %v215_v19, %s277_s8  ;;  %121 = vrot.lane.b32.xlu1 %v216_v20, %s278_s9  ;;  %s287_s9 = smov 12  }
  0x2a   :  { %127 = vrot.lane.b32.xlu0 %v217_v21, %s279_s14  ;;  %133 = vrot.lane.b32.xlu1 %v218_v22, %s280_s15 }
  0x2e   :  { %139 = vrot.lane.b32.xlu0 %v219_v23, %s281_s20  ;;  %145 = vrot.lane.b32.xlu1 %v220_v24, %s282_s21 }
  0x32   :  { %151 = vrot.lane.b32.xlu0 %v221_v25, %s283_s26  ;;  %157 = vrot.lane.b32.xlu1 %v222_v26, %s284_s27 }
  0x36   :  { %163 = vrot.lane.b32.xlu0 %v223_v27, %s285_s3  ;;  %169 = vrot.lane.b32.xlu1 %v224_v28, %s286_s4 }
  0x3a   :  { %175 = vrot.lane.b32.xlu0 %v225_v29, %s287_s9  ;;  %181 = vrot.lane.b32.xlu1 %v226_v30, %s288_s10 }
  0x3e   :  { %187 = vrot.lane.b32.xlu0 %v227_v31, %s289_s0 }
  0x74   :  { %v8_v32 = vpop.permute.xlu0 %7   ;;  %v20_v33 = vpop.permute.xlu1 %19  }
  0x75   :  { %10 = vst.msk [vmem:[#allocation0] sm:$0x1] %vm9_vm1, %v8_v32   ;;  %vm105_vm1 = vcmask 523744  }
  0x78   :  { %v14_v34 = vpop.permute.xlu0 %13   ;;  %v26_v35 = vpop.permute.xlu1 %25  }
  0x79   :  { %16 = vst.msk [vmem:[#allocation0] sm:$0x1] %vm15_vm2, %v14_v34   ;;  %vm111_vm2 = vcmask 490944  }
  0x7a   :  { %22 = vst.msk [vmem:[#allocation0] sm:$0x1] %vm21_vm3, %v20_v33   ;;  %vm117_vm3 = vcmask 458144  }
  0x7b   :  { %28 = vst.msk [vmem:[#allocation0] sm:$0x1] %vm27_vm4, %v26_v35   ;;  %vm123_vm4 = vcmask 425344  }
  0x7c   :  { %v32_v36 = vpop.permute.xlu0 %31   ;;  %v38_v37 = vpop.permute.xlu1 %37  }
  0x7d   :  { %34 = vst.msk [vmem:[#allocation0] sm:$0x1] %vm33_vm5, %v32_v36   ;;  %vm129_vm5 = vcmask 392544  }
  0x7e   :  { %40 = vst.msk [vmem:[#allocation0] sm:$0x1] %vm39_vm6, %v38_v37   ;;  %vm135_vm6 = vcmask 359744  }
  0x80   :  { %v44_v38 = vpop.permute.xlu0 %43   ;;  %v50_v39 = vpop.permute.xlu1 %49  }
  0x81   :  { %46 = vst.msk [vmem:[#allocation0] sm:$0x1] %vm45_vm7, %v44_v38   ;;  %vm141_vm7 = vcmask 326944  }
  0x82   :  { %52 = vst.msk [vmem:[#allocation0] sm:$0x1] %vm51_vm8, %v50_v39   ;;  %vm147_vm8 = vcmask 294144  }
  0x84   :  { %v56_v40 = vpop.permute.xlu0 %55   ;;  %v62_v41 = vpop.permute.xlu1 %61  }
  0x85   :  { %58 = vst.msk [vmem:[#allocation0] sm:$0x1] %vm57_vm9, %v56_v40   ;;  %vm153_vm9 = vcmask 261344  }
  0x86   :  { %64 = vst.msk [vmem:[#allocation0] sm:$0x1] %vm63_vm10, %v62_v41   ;;  %vm159_vm10 = vcmask 228544  }
  0x88   :  { %v68_v42 = vpop.permute.xlu0 %67   ;;  %v74_v43 = vpop.permute.xlu1 %73  }
  0x89   :  { %70 = vst.msk [vmem:[#allocation0] sm:$0x1] %vm69_vm11, %v68_v42   ;;  %vm165_vm11 = vcmask 195744  }
  0x8a   :  { %76 = vst.msk [vmem:[#allocation0] sm:$0x1] %vm75_vm12, %v74_v43   ;;  %vm171_vm12 = vcmask 162944  }
  0x8c   :  { %v80_v44 = vpop.permute.xlu0 %79   ;;  %v86_v45 = vpop.permute.xlu1 %85  }
  0x8d   :  { %82 = vst.msk [vmem:[#allocation0] sm:$0x1] %vm81_vm13, %v80_v44   ;;  %vm177_vm13 = vcmask 130144  }
  0x8e   :  { %88 = vst.msk [vmem:[#allocation0] sm:$0x1] %vm87_vm14, %v86_v45   ;;  %vm183_vm14 = vcmask 97344  }
  0x90   :  { %v92_v46 = vpop.permute.xlu0 %91   ;;  %v98_v47 = vpop.permute.xlu1 %97  }
  0x91   :  { %94 = vst.msk [vmem:[#allocation0] sm:$0x1] %vm93_vm15, %v92_v46   ;;  %vm189_vm15 = vcmask 64544  }
  0x92   :  { %100 = vst.msk [vmem:[#allocation0] sm:$0x1] %vm99_vm0, %v98_v47  }
  0x94   :  { %v104_v48 = vpop.permute.xlu0 %103   ;;  %v110_v49 = vpop.permute.xlu1 %109  }
  0x95   :  { %106 = vst.msk [vmem:[#allocation0] sm:$0x1] %vm105_vm1, %v104_v48  }
  0x96   :  { %112 = vst.msk [vmem:[#allocation0] sm:$0x1] %vm111_vm2, %v110_v49  }
  0x98   :  { %v116_v50 = vpop.permute.xlu0 %115   ;;  %v122_v51 = vpop.permute.xlu1 %121  }
  0x99   :  { %118 = vst.msk [vmem:[#allocation0] sm:$0x1] %vm117_vm3, %v116_v50  }
  0x9a   :  { %124 = vst.msk [vmem:[#allocation0] sm:$0x1] %vm123_vm4, %v122_v51  }
  0x9c   :  { %v128_v52 = vpop.permute.xlu0 %127   ;;  %v134_v53 = vpop.permute.xlu1 %133  }
  0x9d   :  { %130 = vst.msk [vmem:[#allocation0] sm:$0x1] %vm129_vm5, %v128_v52  }
  0x9e   :  { %136 = vst.msk [vmem:[#allocation0] sm:$0x1] %vm135_vm6, %v134_v53  }
  0xa0   :  { %v140_v54 = vpop.permute.xlu0 %139   ;;  %v146_v55 = vpop.permute.xlu1 %145  }
  0xa1   :  { %142 = vst.msk [vmem:[#allocation0] sm:$0x1] %vm141_vm7, %v140_v54  }
  0xa2   :  { %148 = vst.msk [vmem:[#allocation0] sm:$0x1] %vm147_vm8, %v146_v55  }
  0xa4   :  { %v152_v56 = vpop.permute.xlu0 %151   ;;  %v158_v57 = vpop.permute.xlu1 %157  }
  0xa5   :  { %154 = vst.msk [vmem:[#allocation0] sm:$0x1] %vm153_vm9, %v152_v56  }
  0xa6   :  { %160 = vst.msk [vmem:[#allocation0] sm:$0x1] %vm159_vm10, %v158_v57  }
  0xa8   :  { %v164_v58 = vpop.permute.xlu0 %163   ;;  %v170_v59 = vpop.permute.xlu1 %169  }
  0xa9   :  { %166 = vst.msk [vmem:[#allocation0] sm:$0x1] %vm165_vm11, %v164_v58  }
  0xaa   :  { %172 = vst.msk [vmem:[#allocation0] sm:$0x1] %vm171_vm12, %v170_v59  }
  0xac   :  { %v176_v60 = vpop.permute.xlu0 %175   ;;  %v182_v61 = vpop.permute.xlu1 %181  }
  0xad   :  { %178 = vst.msk [vmem:[#allocation0] sm:$0x1] %vm177_vm13, %v176_v60  }
  0xae   :  { %184 = vst.msk [vmem:[#allocation0] sm:$0x1] %vm183_vm14, %v182_v61  }
  0xb0   :  { %v188_v62 = vpop.permute.xlu0 %187  }
  0xb1   :  { %190 = vst.msk [vmem:[#allocation0] sm:$0x1] %vm189_vm15, %v188_v62  }
  0xb8   :  { %v194_v63 = vld [vmem:[#allocation0] sm:$0x1] }
  0xb9   :  { %196 = vst [vmem:[%s400_s1] sm:$0x1] %v194_v63 }

// kernel: hourglass_forward.11
= control target key start
LH: loop header
LB: loop body
LE: loop exit
PB: predicated region body
PF: predicated region fallthrough
CT: control target
= control target key end

     0   :  { %s311_s2 = inlined_call_operand.vmem [shape: bf16[128,128], index: 2, kind: input, shape index: {}]   ;;  %s312_s1 = inlined_call_operand.vmem [shape: bf16[32,128], index: 1, kind: input, shape index: {}]   ;;  %s313_s0 = inlined_call_operand.vmem [shape: f32[32,128], index: 0, kind: input, shape index: {}]   ;;  %s314_s3 = inlined_call_operand.vmem [shape: f32[1,128], index: 3, kind: input, shape index: {}]   ;;  %s315_s4 = inlined_call_operand.vmem [shape: f32[32,128], index: 4, kind: output, shape index: {}]  }
   0x1   :  { %v219_v0 = vld [vmem:[%s311_s2] sm:$0xff]   ;;  %v220_v1 = vld [vmem:[%s311_s2 + $0x8] sm:$0xff]   ;;  %v221_v2 = vld [vmem:[%s311_s2 + $0x10] sm:$0xff]  }
   0x2   :  { %199 = vmatprep.subr.bf16.mxu0 %v219_v0  ;;  %v222_v3 = vld [vmem:[%s311_s2 + $0x18] sm:$0xff]   ;;  %v227_v4 = vld [vmem:[%s312_s1] sm:$0xff]   ;;  %v224_v6 = vld [vmem:[%s311_s2 + $0x28] sm:$0xff]  }
   0x3   :  { %200 = vmatpush3.bf16.msra.mxu0 %v219_v0  ;;  %215 = vmatprep.mubr.bf16.mxu0 %v227_v4  ;;  %v223_v5 = vld [vmem:[%s311_s2 + $0x20] sm:$0xff]   ;;  %v225_v7 = vld [vmem:[%s311_s2 + $0x30] sm:$0xff]   ;;  %v226_v8 = vld [vmem:[%s311_s2 + $0x38] sm:$0xff]  }
   0x4   :  { %201 = vmatprep.subr.bf16.mxu0 %v220_v1  ;;  %v228_v9 = vld [vmem:[%s312_s1 + $0x8] sm:$0xff]   ;;  %v149_v10 = vld [vmem:[%s313_s0 + $0x10] sm:$0xff]  ;;  %v147_v11 = vld [vmem:[%s313_s0] sm:$0xff] }
   0x5   :  { %v188_v13 = vld [vmem:[%s314_s3] ss:$0 sm:$0xff]  ;;  %v150_v14 = vld [vmem:[%s313_s0 + $0x18] sm:$0xff]  ;;  %v148_v17 = vld [vmem:[%s313_s0 + $0x8] sm:$0xff] }
   0x7   :  { %202 = vmatpush3.bf16.msra.mxu0 %v220_v1 }
   0x8   :  { %203 = vmatprep.subr.bf16.mxu0 %v221_v2 }
   0xb   :  { %204 = vmatpush3.bf16.msra.mxu0 %v221_v2 }
   0xc   :  { %205 = vmatprep.subr.bf16.mxu0 %v222_v3 }
   0xf   :  { %206 = vmatpush3.bf16.msra.mxu0 %v222_v3 }
  0x10   :  { %207 = vmatprep.subr.bf16.mxu0 %v223_v5 }
  0x13   :  { %208 = vmatpush3.bf16.msra.mxu0 %v223_v5 }
  0x14   :  { %209 = vmatprep.subr.bf16.mxu0 %v224_v6 }
  0x17   :  { %210 = vmatpush3.bf16.msra.mxu0 %v224_v6 }
  0x18   :  { %211 = vmatprep.subr.bf16.mxu0 %v225_v7 }
  0x1b   :  { %212 = vmatpush3.bf16.msra.mxu0 %v225_v7 }
  0x1c   :  { %213 = vmatprep.subr.bf16.mxu0 %v226_v8 }
  0x1f   :  { %214 = vmatpush3.bf16.msra.mxu0 %v226_v8 }
  0x22   :  { %216 = vmatmul.mubr.bf16.vlgmr.msra.gmra.mrb[0].mxu0 %v228_v9 }
  0xf5   :  { %v217_v12 = vpop.f32.mrb[0].mxu0 }
  0xf6   :  { %v153_v15 = vadd.f32 %v217_v12, %v149_v10  ;;  %v132_v16 = vpop.f32.mrb[1].mxu0 }
  0xf7   :  { %v151_v18 = vadd.f32 %v147_v11, %v132_v16  ;;  %v218_v19 = vpop.f32.mrb[2].mxu0 }
  0xf8   :  { %v164_v20 = vadd.f32 %v188_v13, %v153_v15  ;;  %v154_v21 = vadd.f32 %v218_v19, %v150_v14  ;;  %v135_v22 = vpop.f32.mrb[3].mxu0 }
  0xf9   :  { %v162_v23 = vadd.f32 %v188_v13, %v151_v18  ;;  %v152_v24 = vadd.f32 %v148_v17, %v135_v22 }
  0xfa   :  { %v168_v25 = vmax.f32 %v164_v20, 0.0  ;;  %v165_v26 = vadd.f32 %v188_v13, %v154_v21 }
  0xfb   :  { %v166_v27 = vmax.f32 %v162_v23, 0.0  ;;  %v163_v28 = vadd.f32 %v188_v13, %v152_v24 }
  0xfc   :  { %172 = vst [vmem:[%s315_s4 + $0x10] sm:$0xff] %v168_v25  ;;  %v169_v29 = vmax.f32 %v165_v26, 0.0 }
  0xfd   :  { %170 = vst [vmem:[%s315_s4] sm:$0xff] %v166_v27  ;;  %v167_v30 = vmax.f32 %v163_v28, 0.0 }
  0xfe   :  { %173 = vst [vmem:[%s315_s4 + $0x18] sm:$0xff] %v169_v29 }
  0xff   :  { %171 = vst [vmem:[%s315_s4 + $0x8] sm:$0xff] %v167_v30 }

</bundles_post_ra>
